<compile_context>
chip_gen: v5e
topology: v5e:2x2
jax: 0.10.0
libtpu: 0.0.40
codegen_flags: <defaults>
</compile_context>

<pallas_src>
import functools

import jax
import jax.numpy as jnp
import numpy as np
from jax.experimental import pallas as pl
from jax.experimental.pallas import tpu as pltpu

# Make the pure-JAX reference use true fp32 matmuls so the 1e-4 comparison is meaningful.
jax.config.update("jax_default_matmul_precision", "highest")


def _round_up(x, m):
    return (x + m - 1) // m * m


# ----------------------------- Pallas kernel -----------------------------------------

def _attention_equ_kernel(gsrc_ref, a_ref, xsrc_ref, xdst_ref, wv_ref, wo_ref,
                          out_ref, acc_ref, *, num_l):
    """One (group g, head h) grid step.

    gsrc_ref : SMEM (G,)       scalar-prefetched routing table (only used by index_maps)
    a_ref    : VMEM (Np, Np)   attention block for (g, h)
    xsrc_ref : VMEM (L, Np, Cp) source-stream activations (routed via g_src[g])
    xdst_ref : VMEM (L, Np, Cp) destination-stream activations (residual)
    wv_ref   : VMEM (Cp, c)    head-h column slice of proj_v^T
    wo_ref   : VMEM (c, Cp)    head-h row slice of output^T
    out_ref  : VMEM (L, Np, Cp)
    acc_ref  : VMEM (L, Np, Cp) f32 accumulator across heads
    """
    del gsrc_ref  # only consumed by the BlockSpec index_maps
    h = pl.program_id(1)

    @pl.when(h == 0)
    def _init():
        acc_ref[...] = jnp.zeros_like(acc_ref)

    a = a_ref[...]
    wv = wv_ref[...]
    wo = wo_ref[...]
    for l in range(num_l):  # static unroll; L is tiny (typically 3)
        v_l = jnp.dot(xsrc_ref[l], wv, preferred_element_type=jnp.float32)   # (Np, c)
        t_l = jnp.dot(a, v_l, preferred_element_type=jnp.float32)            # (Np, c)
        acc_ref[l] += jnp.dot(t_l, wo, preferred_element_type=jnp.float32)   # (Np, Cp)

    @pl.when(h == pl.num_programs(1) - 1)
    def _finalize():
        out_ref[...] = acc_ref[...] + xdst_ref[...]


# ----------------------------- wrapper -----------------------------------------------

@functools.partial(jax.jit, static_argnums=(0, 6))
def attention_equ_forward(block, attention, equ1, equ2, w_proj_v, w_output, num_heads):
    """Forward of `attention_equ`.

    block     : 'self' or 'cross' (static)
    attention : (2, B, H, N, N) -- stacked (attention[0], attention[1])
    equ1/equ2 : (B, N, L, C) with C = num_heads * head_dim
    w_proj_v  : (C, C) nn.Linear weight (out_features, in_features), bias=False
    w_output  : (C, C) nn.Linear weight (out_features, in_features), bias=False
    returns (equ_new1, equ_new2), each (B, N, L, C)
    """
    if block not in ("self", "cross"):
        raise ValueError(f'Unsupported block type "{block}".')
    B, N, L, C = equ1.shape
    H = num_heads
    assert C % H == 0
    c = C // H
    G = 2 * B                                   # (stream, batch) groups
    Np = _round_up(N, 8)                        # sublane-aligned point count
    Cp = _round_up(C, 128)                      # lane-aligned channel count

    # ---- wrapper-side layout plumbing (small; fused into one XLA prep fusion) -------
    # Activations: (G, L, N, C) -> zero-pad to (G, L, Np, Cp).  Lanes = channels.
    x = jnp.concatenate([equ1, equ2], axis=0)                 # (G, N, L, C)
    x = jnp.transpose(x, (0, 2, 1, 3))                        # (G, L, N, C)
    x = jnp.pad(x, ((0, 0), (0, 0), (0, Np - N), (0, Cp - C)))

    # Attention: (2, B, H, N, N) -> (G, H, Np, Np), zero-padded rows/cols.
    a = attention.reshape(G, H, N, N)
    a = jnp.pad(a, ((0, 0), (0, 0), (0, Np - N), (0, Np - N)))

    # Per-head weight slices (pre-transposed to (in, out)); head select happens via
    # the BlockSpec index_map, not in-kernel lane slicing.
    wvT = w_proj_v.T                                          # (C_in, C_out)
    woT = w_output.T                                          # (C_in, C_out)
    wv_h = jnp.transpose(wvT.reshape(C, H, c), (1, 0, 2))     # (H, C, c)
    wv_h = jnp.pad(wv_h, ((0, 0), (0, Cp - C), (0, 0)))       # (H, Cp, c)
    wo_h = woT.reshape(H, c, C)                               # (H, c, C)
    wo_h = jnp.pad(wo_h, ((0, 0), (0, 0), (0, Cp - C)))       # (H, c, Cp)

    # Self/cross value routing table (scalar-prefetched into SMEM).
    g_idx = jnp.arange(G, dtype=jnp.int32)
    g_src = g_idx if block == "self" else (g_idx + B) % G

    # VMEM budget (double-buffered inputs/output + accumulator), clamped to v7x physical.
    a_bytes = Np * Np * 4
    x_bytes = L * Np * Cp * 4
    w_bytes = 2 * Cp * c * 4
    vmem_need = 2 * (a_bytes + 3 * x_bytes + w_bytes) + x_bytes
    vmem_limit = int(min(64 * 1024 * 1024, max(8 * 1024 * 1024, 2 * vmem_need)))

    grid_spec = pltpu.PrefetchScalarGridSpec(
        num_scalar_prefetch=1,
        grid=(G, H),                                          # h innermost (reduction axis)
        in_specs=[
            pl.BlockSpec((None, None, Np, Np), lambda g, h, gs: (g, h, 0, 0)),   # A block
            pl.BlockSpec((None, L, Np, Cp), lambda g, h, gs: (gs[g], 0, 0, 0)),  # x_src (routed)
            pl.BlockSpec((None, L, Np, Cp), lambda g, h, gs: (g, 0, 0, 0)),      # x_dst (residual)
            pl.BlockSpec((None, Cp, c), lambda g, h, gs: (h, 0, 0)),             # Wv^T head slice
            pl.BlockSpec((None, c, Cp), lambda g, h, gs: (h, 0, 0)),             # Wo^T head slice
        ],
        out_specs=pl.BlockSpec((None, L, Np, Cp), lambda g, h, gs: (g, 0, 0, 0)),
        scratch_shapes=[pltpu.VMEM((L, Np, Cp), jnp.float32)],
    )

    out_padded = pl.pallas_call(
        functools.partial(_attention_equ_kernel, num_l=L),
        grid_spec=grid_spec,
        out_shape=jax.ShapeDtypeStruct((G, L, Np, Cp), jnp.float32),
        compiler_params=pltpu.CompilerParams(
            dimension_semantics=("parallel", "arbitrary"),
            vmem_limit_bytes=vmem_limit,
        ),
    )(g_src, a, x, x, wv_h, wo_h)

    out = out_padded[:, :, :N, :C]                            # (G, L, N, C)
    out = jnp.transpose(out, (0, 2, 1, 3))                    # (G, N, L, C)
    return out[:B], out[B:]


# ----------------------------- pure-JAX reference ------------------------------------

def _ref_attention_op(equ, attn, wv, wo, num_heads):
    B, Nk, L, C = equ.shape
    ch = C // num_heads
    v = jnp.einsum("bklc,oc->bklo", equ, wv)                  # proj_v: x @ Wv.T
    v = v.reshape(B, Nk, L, num_heads, ch)
    v = jnp.transpose(v, (0, 3, 2, 1, 4))                     # b h l n c
    a = attn[:, :, None, :, :]                                # (B, H, 1, Nq, Nk)
    out = jnp.matmul(a, v)                                    # (B, H, L, Nq, ch)
    out = jnp.transpose(out, (0, 3, 2, 1, 4)).reshape(B, out.shape[3], L, C)
    out = jnp.einsum("bnlc,oc->bnlo", out, wo)                # output projection
    return out


def _ref_forward(block, attention, equ1, equ2, wv, wo, num_heads):
    if block == "self":
        o1 = _ref_attention_op(equ1, attention[0], wv, wo, num_heads) + equ1
        o2 = _ref_attention_op(equ2, attention[1], wv, wo, num_heads) + equ2
    else:
        o1 = _ref_attention_op(equ2, attention[0], wv, wo, num_heads) + equ1
        o2 = _ref_attention_op(equ1, attention[1], wv, wo, num_heads) + equ2
    return o1, o2


# ----------------------------- demo / check ------------------------------------------

if __name__ == "__main__":
    B, N, L, C, H = 2, 8, 3, 32, 4

    key = jax.random.PRNGKey(0)
    k1, k2, ka, kv, ko = jax.random.split(key, 5)
    equ1 = jax.random.normal(k1, (B, N, L, C), dtype=jnp.float32)
    equ2 = jax.random.normal(k2, (B, N, L, C), dtype=jnp.float32)
    attention = jax.nn.softmax(
        jax.random.normal(ka, (2, B, H, N, N), dtype=jnp.float32), axis=-1)
    w_proj_v = 0.1 * jax.random.normal(kv, (C, C), dtype=jnp.float32)
    w_output = 0.1 * jax.random.normal(ko, (C, C), dtype=jnp.float32)

    for block in ("self", "cross"):
        out1, out2 = attention_equ_forward(block, attention, equ1, equ2,
                                           w_proj_v, w_output, H)
        out1 = jax.block_until_ready(out1)
        out2 = jax.block_until_ready(out2)

        ref1, ref2 = _ref_forward(block, attention, equ1, equ2, w_proj_v, w_output, H)
        np.testing.assert_allclose(np.asarray(out1), np.asarray(ref1), rtol=1e-4, atol=1e-4)
        np.testing.assert_allclose(np.asarray(out2), np.asarray(ref2), rtol=1e-4, atol=1e-4)

    print("KERNEL_OK")
</pallas_src>

<mosaic_0001>
module attributes {stable_mosaic.version = 11 : i64} {
  func.func @_attention_equ_kernel(%arg0: i32, %arg1: i32, %arg2: memref<4xi32, #tpu.memory_space<smem>>, %arg3: memref<1x1x8x8xf32, #tpu.memory_space<vmem>>, %arg4: memref<1x3x8x128xf32, #tpu.memory_space<vmem>>, %arg5: memref<1x3x8x128xf32, #tpu.memory_space<vmem>>, %arg6: memref<1x128x8xf32, #tpu.memory_space<vmem>>, %arg7: memref<1x8x128xf32, #tpu.memory_space<vmem>>, %arg8: memref<1x3x8x128xf32, #tpu.memory_space<vmem>>, %arg9: memref<3x8x128xf32, #tpu.memory_space<vmem>>) attributes {dimension_semantics = [#tpu.dimension_semantics<parallel>, #tpu.dimension_semantics<arbitrary>], iteration_bounds = array<i64: 4, 4>, scalar_prefetch = 1 : i64, scratch_operands = 1 : i64, tpu.core_type = #tpu.core_type<tc>, window_params = [{transform_indices = @transform_0, window_bounds = array<i64: 1, 1, 8, 8>}, {transform_indices = @transform_1, window_bounds = array<i64: 1, 3, 8, 128>}, {transform_indices = @transform_2, window_bounds = array<i64: 1, 3, 8, 128>}, {transform_indices = @transform_3, window_bounds = array<i64: 1, 128, 8>}, {transform_indices = @transform_4, window_bounds = array<i64: 1, 8, 128>}, {transform_indices = @transform_5, window_bounds = array<i64: 1, 3, 8, 128>}]} {
    %c0_i32 = arith.constant 0 : i32
    %0 = arith.cmpi eq, %arg1, %c0_i32 : i32
    %1 = arith.extui %0 : i1 to i32
    %c0_i32_0 = arith.constant 0 : i32
    %2 = arith.cmpi ne, %1, %c0_i32_0 : i32
    scf.if %2 {
      %cst_47 = arith.constant 0.000000e+00 : f32
      %45 = vector.broadcast %cst_47 : f32 to vector<3x8x128xf32>
      %c0_48 = arith.constant 0 : index
      %c0_49 = arith.constant 0 : index
      %c0_50 = arith.constant 0 : index
      %46 = vector.load %arg9[%c0_48, %c0_49, %c0_50] : memref<3x8x128xf32, #tpu.memory_space<vmem>>, vector<3x8x128xf32>
      tpu.vector_store %arg9[%c0_48, %c0_49, %c0_50], %45 {strides = array<i32>} : memref<3x8x128xf32, #tpu.memory_space<vmem>>, vector<3x8x128xf32>,
    } else {
    }
    %c0 = arith.constant 0 : index
    %c0_1 = arith.constant 0 : index
    %c0_2 = arith.constant 0 : index
    %c0_3 = arith.constant 0 : index
    %3 = vector.load %arg3[%c0, %c0_1, %c0_2, %c0_3] : memref<1x1x8x8xf32, #tpu.memory_space<vmem>>, vector<1x1x8x8xf32>
    %4 = vector.shape_cast %3 : vector<1x1x8x8xf32> to vector<8x8xf32>
    %c0_4 = arith.constant 0 : index
    %c0_5 = arith.constant 0 : index
    %c0_6 = arith.constant 0 : index
    %5 = vector.load %arg6[%c0_4, %c0_5, %c0_6] : memref<1x128x8xf32, #tpu.memory_space<vmem>>, vector<1x128x8xf32>
    %6 = vector.shape_cast %5 : vector<1x128x8xf32> to vector<128x8xf32>
    %c0_7 = arith.constant 0 : index
    %c0_8 = arith.constant 0 : index
    %c0_9 = arith.constant 0 : index
    %7 = vector.load %arg7[%c0_7, %c0_8, %c0_9] : memref<1x8x128xf32, #tpu.memory_space<vmem>>, vector<1x8x128xf32>
    %8 = vector.shape_cast %7 : vector<1x8x128xf32> to vector<8x128xf32>
    %c0_10 = arith.constant 0 : index
    %c0_11 = arith.constant 0 : index
    %c0_12 = arith.constant 0 : index
    %c0_13 = arith.constant 0 : index
    %9 = vector.load %arg4[%c0_10, %c0_11, %c0_12, %c0_13] : memref<1x3x8x128xf32, #tpu.memory_space<vmem>>, vector<1x1x8x128xf32>
    %10 = vector.shape_cast %9 : vector<1x1x8x128xf32> to vector<8x128xf32>
    %cst = arith.constant dense<0.000000e+00> : vector<8x8xf32>
    %11 = tpu.matmul %10, %6, %cst {dimension_numbers = #tpu.dot_dimension_numbers<[1], [0], [0], [1], [0, 0, 1, 1], [], []>, precision = #tpu.contract_precision<fp32>} : vector<8x128xf32>, vector<128x8xf32>, vector<8x8xf32> -> vector<8x8xf32>
    %cst_14 = arith.constant dense<0.000000e+00> : vector<8x8xf32>
    %12 = tpu.matmul %4, %11, %cst_14 {dimension_numbers = #tpu.dot_dimension_numbers<[1], [0], [0], [1], [0, 0, 1, 1], [], []>, precision = #tpu.contract_precision<fp32>} : vector<8x8xf32>, vector<8x8xf32>, vector<8x8xf32> -> vector<8x8xf32>
    %c0_15 = arith.constant 0 : index
    %c0_16 = arith.constant 0 : index
    %c0_17 = arith.constant 0 : index
    %13 = vector.load %arg9[%c0_15, %c0_16, %c0_17] : memref<3x8x128xf32, #tpu.memory_space<vmem>>, vector<1x8x128xf32>
    %14 = vector.shape_cast %13 : vector<1x8x128xf32> to vector<8x128xf32>
    %cst_18 = arith.constant dense<0.000000e+00> : vector<8x128xf32>
    %15 = tpu.matmul %12, %8, %cst_18 {dimension_numbers = #tpu.dot_dimension_numbers<[1], [0], [0], [1], [0, 0, 1, 1], [], []>, precision = #tpu.contract_precision<fp32>} : vector<8x8xf32>, vector<8x128xf32>, vector<8x128xf32> -> vector<8x128xf32>
    %16 = arith.addf %14, %15 : vector<8x128xf32>
    %c0_19 = arith.constant 0 : index
    %c0_20 = arith.constant 0 : index
    %c0_21 = arith.constant 0 : index
    %17 = vector.load %arg9[%c0_19, %c0_20, %c0_21] : memref<3x8x128xf32, #tpu.memory_space<vmem>>, vector<1x8x128xf32>
    %18 = vector.shape_cast %17 : vector<1x8x128xf32> to vector<8x128xf32>
    %19 = vector.shape_cast %16 : vector<8x128xf32> to vector<1x8x128xf32>
    tpu.vector_store %arg9[%c0_19, %c0_20, %c0_21], %19 {strides = array<i32>} : memref<3x8x128xf32, #tpu.memory_space<vmem>>, vector<1x8x128xf32>,
    %c0_22 = arith.constant 0 : index
    %c1 = arith.constant 1 : index
    %c0_23 = arith.constant 0 : index
    %c0_24 = arith.constant 0 : index
    %20 = vector.load %arg4[%c0_22, %c1, %c0_23, %c0_24] : memref<1x3x8x128xf32, #tpu.memory_space<vmem>>, vector<1x1x8x128xf32>
    %21 = vector.shape_cast %20 : vector<1x1x8x128xf32> to vector<8x128xf32>
    %cst_25 = arith.constant dense<0.000000e+00> : vector<8x8xf32>
    %22 = tpu.matmul %21, %6, %cst_25 {dimension_numbers = #tpu.dot_dimension_numbers<[1], [0], [0], [1], [0, 0, 1, 1], [], []>, precision = #tpu.contract_precision<fp32>} : vector<8x128xf32>, vector<128x8xf32>, vector<8x8xf32> -> vector<8x8xf32>
    %cst_26 = arith.constant dense<0.000000e+00> : vector<8x8xf32>
    %23 = tpu.matmul %4, %22, %cst_26 {dimension_numbers = #tpu.dot_dimension_numbers<[1], [0], [0], [1], [0, 0, 1, 1], [], []>, precision = #tpu.contract_precision<fp32>} : vector<8x8xf32>, vector<8x8xf32>, vector<8x8xf32> -> vector<8x8xf32>
    %c1_27 = arith.constant 1 : index
    %c0_28 = arith.constant 0 : index
    %c0_29 = arith.constant 0 : index
    %24 = vector.load %arg9[%c1_27, %c0_28, %c0_29] : memref<3x8x128xf32, #tpu.memory_space<vmem>>, vector<1x8x128xf32>
    %25 = vector.shape_cast %24 : vector<1x8x128xf32> to vector<8x128xf32>
    %cst_30 = arith.constant dense<0.000000e+00> : vector<8x128xf32>
    %26 = tpu.matmul %23, %8, %cst_30 {dimension_numbers = #tpu.dot_dimension_numbers<[1], [0], [0], [1], [0, 0, 1, 1], [], []>, precision = #tpu.contract_precision<fp32>} : vector<8x8xf32>, vector<8x128xf32>, vector<8x128xf32> -> vector<8x128xf32>
    %27 = arith.addf %25, %26 : vector<8x128xf32>
    %c1_31 = arith.constant 1 : index
    %c0_32 = arith.constant 0 : index
    %c0_33 = arith.constant 0 : index
    %28 = vector.load %arg9[%c1_31, %c0_32, %c0_33] : memref<3x8x128xf32, #tpu.memory_space<vmem>>, vector<1x8x128xf32>
    %29 = vector.shape_cast %28 : vector<1x8x128xf32> to vector<8x128xf32>
    %30 = vector.shape_cast %27 : vector<8x128xf32> to vector<1x8x128xf32>
    tpu.vector_store %arg9[%c1_31, %c0_32, %c0_33], %30 {strides = array<i32>} : memref<3x8x128xf32, #tpu.memory_space<vmem>>, vector<1x8x128xf32>,
    %c0_34 = arith.constant 0 : index
    %c2 = arith.constant 2 : index
    %c0_35 = arith.constant 0 : index
    %c0_36 = arith.constant 0 : index
    %31 = vector.load %arg4[%c0_34, %c2, %c0_35, %c0_36] : memref<1x3x8x128xf32, #tpu.memory_space<vmem>>, vector<1x1x8x128xf32>
    %32 = vector.shape_cast %31 : vector<1x1x8x128xf32> to vector<8x128xf32>
    %cst_37 = arith.constant dense<0.000000e+00> : vector<8x8xf32>
    %33 = tpu.matmul %32, %6, %cst_37 {dimension_numbers = #tpu.dot_dimension_numbers<[1], [0], [0], [1], [0, 0, 1, 1], [], []>, precision = #tpu.contract_precision<fp32>} : vector<8x128xf32>, vector<128x8xf32>, vector<8x8xf32> -> vector<8x8xf32>
    %cst_38 = arith.constant dense<0.000000e+00> : vector<8x8xf32>
    %34 = tpu.matmul %4, %33, %cst_38 {dimension_numbers = #tpu.dot_dimension_numbers<[1], [0], [0], [1], [0, 0, 1, 1], [], []>, precision = #tpu.contract_precision<fp32>} : vector<8x8xf32>, vector<8x8xf32>, vector<8x8xf32> -> vector<8x8xf32>
    %c2_39 = arith.constant 2 : index
    %c0_40 = arith.constant 0 : index
    %c0_41 = arith.constant 0 : index
    %35 = vector.load %arg9[%c2_39, %c0_40, %c0_41] : memref<3x8x128xf32, #tpu.memory_space<vmem>>, vector<1x8x128xf32>
    %36 = vector.shape_cast %35 : vector<1x8x128xf32> to vector<8x128xf32>
    %cst_42 = arith.constant dense<0.000000e+00> : vector<8x128xf32>
    %37 = tpu.matmul %34, %8, %cst_42 {dimension_numbers = #tpu.dot_dimension_numbers<[1], [0], [0], [1], [0, 0, 1, 1], [], []>, precision = #tpu.contract_precision<fp32>} : vector<8x8xf32>, vector<8x128xf32>, vector<8x128xf32> -> vector<8x128xf32>
    %38 = arith.addf %36, %37 : vector<8x128xf32>
    %c2_43 = arith.constant 2 : index
    %c0_44 = arith.constant 0 : index
    %c0_45 = arith.constant 0 : index
    %39 = vector.load %arg9[%c2_43, %c0_44, %c0_45] : memref<3x8x128xf32, #tpu.memory_space<vmem>>, vector<1x8x128xf32>
    %40 = vector.shape_cast %39 : vector<1x8x128xf32> to vector<8x128xf32>
    %41 = vector.shape_cast %38 : vector<8x128xf32> to vector<1x8x128xf32>
    tpu.vector_store %arg9[%c2_43, %c0_44, %c0_45], %41 {strides = array<i32>} : memref<3x8x128xf32, #tpu.memory_space<vmem>>, vector<1x8x128xf32>,
    %c3_i32 = arith.constant 3 : i32
    %42 = arith.cmpi eq, %arg1, %c3_i32 : i32
    %43 = arith.extui %42 : i1 to i32
    %c0_i32_46 = arith.constant 0 : i32
    %44 = arith.cmpi ne, %43, %c0_i32_46 : i32
    scf.if %44 {
      %c0_47 = arith.constant 0 : index
      %c0_48 = arith.constant 0 : index
      %c0_49 = arith.constant 0 : index
      %45 = vector.load %arg9[%c0_47, %c0_48, %c0_49] : memref<3x8x128xf32, #tpu.memory_space<vmem>>, vector<3x8x128xf32>
      %c0_50 = arith.constant 0 : index
      %c0_51 = arith.constant 0 : index
      %c0_52 = arith.constant 0 : index
      %c0_53 = arith.constant 0 : index
      %46 = vector.load %arg5[%c0_50, %c0_51, %c0_52, %c0_53] : memref<1x3x8x128xf32, #tpu.memory_space<vmem>>, vector<1x3x8x128xf32>
      %47 = vector.shape_cast %46 : vector<1x3x8x128xf32> to vector<3x8x128xf32>
      %48 = arith.addf %45, %47 : vector<3x8x128xf32>
      %c0_54 = arith.constant 0 : index
      %c0_55 = arith.constant 0 : index
      %c0_56 = arith.constant 0 : index
      %c0_57 = arith.constant 0 : index
      %49 = vector.load %arg8[%c0_54, %c0_55, %c0_56, %c0_57] : memref<1x3x8x128xf32, #tpu.memory_space<vmem>>, vector<1x3x8x128xf32>
      %50 = vector.shape_cast %49 : vector<1x3x8x128xf32> to vector<3x8x128xf32>
      %51 = vector.shape_cast %48 : vector<3x8x128xf32> to vector<1x3x8x128xf32>
      tpu.vector_store %arg8[%c0_54, %c0_55, %c0_56, %c0_57], %51 {strides = array<i32>} : memref<1x3x8x128xf32, #tpu.memory_space<vmem>>, vector<1x3x8x128xf32>,
    } else {
    }
    return
  }
  func.func @transform_0(%arg0: i32, %arg1: i32, %arg2: memref<4xi32, #tpu.memory_space<smem>>) -> (i32, i32, i32, i32) {
    %c0_i32 = arith.constant 0 : i32
    %c0_i32_0 = arith.constant 0 : i32
    %c0_i32_1 = arith.constant 0 : i32
    return %arg0, %arg1, %c0_i32, %c0_i32_0 : i32, i32, i32, i32
  }
  func.func @transform_1(%arg0: i32, %arg1: i32, %arg2: memref<4xi32, #tpu.memory_space<smem>>) -> (i32, i32, i32, i32) {
    %0 = arith.index_cast %arg0 : i32 to index
    %1 = memref.load %arg2[%0] : memref<4xi32, #tpu.memory_space<smem>>
    %c0_i32 = arith.constant 0 : i32
    %c0_i32_0 = arith.constant 0 : i32
    %c0_i32_1 = arith.constant 0 : i32
    %c0_i32_2 = arith.constant 0 : i32
    return %1, %c0_i32, %c0_i32_0, %c0_i32_1 : i32, i32, i32, i32
  }
  func.func @transform_2(%arg0: i32, %arg1: i32, %arg2: memref<4xi32, #tpu.memory_space<smem>>) -> (i32, i32, i32, i32) {
    %c0_i32 = arith.constant 0 : i32
    %c0_i32_0 = arith.constant 0 : i32
    %c0_i32_1 = arith.constant 0 : i32
    %c0_i32_2 = arith.constant 0 : i32
    return %arg0, %c0_i32, %c0_i32_0, %c0_i32_1 : i32, i32, i32, i32
  }
  func.func @transform_3(%arg0: i32, %arg1: i32, %arg2: memref<4xi32, #tpu.memory_space<smem>>) -> (i32, i32, i32) {
    %c0_i32 = arith.constant 0 : i32
    %c0_i32_0 = arith.constant 0 : i32
    %c0_i32_1 = arith.constant 0 : i32
    return %arg1, %c0_i32, %c0_i32_0 : i32, i32, i32
  }
  func.func @transform_4(%arg0: i32, %arg1: i32, %arg2: memref<4xi32, #tpu.memory_space<smem>>) -> (i32, i32, i32) {
    %c0_i32 = arith.constant 0 : i32
    %c0_i32_0 = arith.constant 0 : i32
    %c0_i32_1 = arith.constant 0 : i32
    return %arg1, %c0_i32, %c0_i32_0 : i32, i32, i32
  }
  func.func @transform_5(%arg0: i32, %arg1: i32, %arg2: memref<4xi32, #tpu.memory_space<smem>>) -> (i32, i32, i32, i32) {
    %c0_i32 = arith.constant 0 : i32
    %c0_i32_0 = arith.constant 0 : i32
    %c0_i32_1 = arith.constant 0 : i32
    %c0_i32_2 = arith.constant 0 : i32
    return %arg0, %c0_i32, %c0_i32_0, %c0_i32_1 : i32, i32, i32, i32
  }
}

</mosaic_0001>

<bundles_post_ra>
// kernel: attention_equ_forward.1
= control target key start
LH: loop header
LB: loop body
LE: loop exit
PB: predicated region body
PF: predicated region fallthrough
CT: control target
= control target key end

     0   :  { %s2548_s24 = smov [#allocation4]   ;;  %s3258_s0 = inlined_call_operand.vmem [shape: s32[4], index: 0, kind: input, shape index: {}]   ;;  %s3259_s1 = inlined_call_operand.vmem [shape: f32[4,4,8,8], index: 1, kind: input, shape index: {}]   ;;  %s3260_s2 = inlined_call_operand.vmem [shape: f32[4,3,8,128], index: 2, kind: input, shape index: {}, may-alias: {2,3}]   ;;  %s3261_s3 = inlined_call_operand.vmem [shape: f32[4,3,8,128], index: 3, kind: input, shape index: {}, may-alias: {2,3}]   ;;  %s3262_s4 = inlined_call_operand.vmem [shape: f32[4,128,8], index: 4, kind: input, shape index: {}]   ;;  %s3263_s5 = inlined_call_operand.vmem [shape: f32[4,8,128], index: 5, kind: input, shape index: {}]   ;;  %s3264_s6 = inlined_call_operand.vmem [shape: f32[4,3,8,128], index: 6, kind: output, shape index: {}]  }
   0x1   :  { %3308 = sst [smem:[#allocation28_spill]] %s3259_s1  ;;  %s12_s23 = sshll.u32 %s3258_s0, 4  ;;  %s13_s23 = int_to_ptr.vmem [resolvable:$true] %s12_s23 }
   0x2   :  { %15 = dma.vmem_to_smem %s13_s23, 16, %s2548_s24, [#allocation3] }
   0x3   :  { %2526 = dma.done.wait [#allocation3], 16 }
   0x4   :  { %2527 = vsyncadd [#allocation3], 4294967280 }
   0x5   :  { %18 = sfence }
   0x6   :  { %s2588_s25 = smov 0   ;;  %s2590_s26 = smov 0  }
   0x7   :  { %s2592_s27 = smov 0   ;;  %s2594_s28 = smov 0  }
   0x8   :  { %s2596_s29 = smov 0  }
   0x9 LB: > { %s33_s0 = sadd.s32 1, %s2538_s27  ;;  %s36_s30 = sadd.s32 1, %s2542_s28  ;;  %s2546_s29 = sphi %s2596_s29, %s24_s29   ;;  %s2542_s28 = sphi %s2594_s28, %s3365_s28   ;;  %s2538_s27 = sphi %s2592_s27, %s3364_s27   ;;  %s2534_s26 = sphi %s2590_s26, %s3363_s26   ;;  %s2530_s25 = sphi %s2588_s25, %s3362_s25  }
   0xa   : > { %p34_p0 = scmp.ge.s32.totalorder %s33_s0, 4  ;;  %p2434_p1 = scmp.ge.s32.totalorder %s2546_s29, 1 }
   0xb   : > { %p256_p2 = scmp.lt.s32.totalorder %s2546_s29, 17 }
   0xc   : > { %s3367_s0 = smov (%p34_p0, %s33_s0), 0  ;;  %s3369_s30 = smov (!%p34_p0, %s36_s30), %s2542_s28 }
   0xd   : > { %p257_p3 = pnand %p2434_p1, %p256_p2  ;;  %p38_p4 = scmp.ge.s32.totalorder %s3369_s30, 4 }
   0xf   : > { %s3371_s30 = smov (%p38_p4, %s3369_s30), 0  ;;  %260 = sbr.rel (%p257_p3) target bundleno = 1259 (0x4eb), region = 40 }
  0x14   : > { %p307_p5 = scmp.lt.s32.totalorder %s2534_s26, 3  ;;  %p309_p6 = scmp.lt.s32.totalorder %s2530_s25, 3 }
  0x15   : > { %s315_s7 = sld [smem:[#allocation4 + %s2534_s26]]  ;;  %p2443_p8 = scmp.ne.s32.totalorder %s2530_s25, 0 }
  0x16   : > { %s3373_s26 = smov (!%p307_p5, %s2534_s26), 3  ;;  %s3309_s1 = sld [smem:[#allocation28_spill]] }
  0x17   : > { %s310_s8 = scalar_select %p309_p6, %s2530_s25, 3 }
  0x18   : > { %s2435_s9 = sshll.u32 %s3373_s26, 2  ;;  %s2451_s10 = smul.u32 24, %s3373_s26 }
  0x19   : > { %s312_s11 = sadd.s32 %s2435_s9, %s310_s8  ;;  %s2449_s12 = sshll.u32 %s310_s8, 7 }
  0x1a   : > { %s2436_s13 = sshll.u32 %s312_s11, 3  ;;  %s2625_s16 = scalar_lea.vmem %s3261_s3, %s2451_s10 }
  0x1b   : > { %p316_p7 = scmp.lt.s32.totalorder %s315_s7, 3  ;;  %s2635_s22 = scalar_lea.vmem %s3262_s4, %s2449_s12 }
  0x1c   : > { %s2630_s19 = scalar_lea.vmem %s3309_s1, %s2436_s13  ;;  %s2441_s23 = sshll.u32 %s310_s8, 3 }
  0x1d   : > { %s3375_s7 = smov (!%p316_p7, %s315_s7), 3  ;;  %s2640_s9 = scalar_lea.vmem %s3263_s5, %s2441_s23 }
  0x1e   : > { %s2645_s15 = scalar_lea.vmem %s3264_s6, %s2451_s10  ;;  %s2450_s13 = smul.u32 24, %s3375_s7 }
  0x1f   : > { %344 = sbr.rel (%p2443_p8) target bundleno = 40 (0x28), region = 44 }
  0x20   : > { %s2650_s1 = scalar_lea.vmem %s3260_s2, %s2450_s13 }
  0x24   : > { %v2549_v0 = vmov 0.0  }
  0x25   : > { %345 = vst [vmem:[#allocation2 + $0x10] sm:$0xff] %v2549_v0 }
  0x26   : > { %346 = vst [vmem:[#allocation2] sm:$0xff] %v2549_v0 }
  0x27   : > { %347 = vst [vmem:[#allocation2 + $0x8] sm:$0xff] %v2549_v0 }
  0x28 PF: > { %v364_v1 = vld [vmem:[%s2635_s22 + $0x78] sm:$0xff]  ;;  %v363_v2 = vld [vmem:[%s2635_s22 + $0x70] sm:$0xff]  ;;  %v362_v3 = vld [vmem:[%s2635_s22 + $0x68] sm:$0xff]  ;;  %vm708_vm0 = vcmask 64512   ;;  %p2446_p9 = scmp.ne.s32.totalorder %s2530_s25, 3 }
  0x29   : > { %v2656_v4 = vand.u32 4294901760, %v364_v1  ;;  %v2658_v5 = vand.u32 4294901760, %v363_v2  ;;  %v2660_v6 = vand.u32 4294901760, %v362_v3  ;;  %v361_v7 = vld [vmem:[%s2635_s22 + $0x60] sm:$0xff]  ;;  %v360_v8 = vld [vmem:[%s2635_s22 + $0x58] sm:$0xff]  ;;  %v359_v9 = vld [vmem:[%s2635_s22 + $0x50] sm:$0xff] }
  0x2a   : > { %v2665_v10 = vand.u32 4294901760, %v361_v7  ;;  %v2667_v11 = vand.u32 4294901760, %v360_v8  ;;  %v2669_v12 = vand.u32 4294901760, %v359_v9  ;;  %v358_v13 = vld [vmem:[%s2635_s22 + $0x48] sm:$0xff]  ;;  %v357_v14 = vld [vmem:[%s2635_s22 + $0x40] sm:$0xff]  ;;  %v356_v19 = vld [vmem:[%s2635_s22 + $0x38] sm:$0xff] }
  0x2b   : > { %368 = vmatpush.msra.mxu0 %v2656_v4  ;;  %v2675_v15 = vsub.f32 %v364_v1, %v2656_v4  ;;  %v2678_v16 = vsub.f32 %v363_v2, %v2658_v5  ;;  %v2681_v17 = vsub.f32 %v362_v3, %v2660_v6  ;;  %v2683_v18 = vand.u32 4294901760, %v358_v13  ;;  %564 = vmatpush.msra.mxu3 %v2656_v4  ;;  %v355_v27 = vld [vmem:[%s2635_s22 + $0x30] sm:$0xff]  ;;  %v354_v37 = vld [vmem:[%s2635_s22 + $0x28] sm:$0xff]  ;;  %v353_v43 = vld [vmem:[%s2635_s22 + $0x20] sm:$0xff] }
  0x2c   : > { %v2688_v20 = vsub.f32 %v361_v7, %v2665_v10  ;;  %v2691_v21 = vsub.f32 %v360_v8, %v2667_v11  ;;  %v2694_v22 = vsub.f32 %v359_v9, %v2669_v12  ;;  %v2706_v26 = vand.u32 4294901760, %v357_v14  ;;  %v352_v48 = vld [vmem:[%s2635_s22 + $0x18] sm:$0xff]  ;;  %v351_v56 = vld [vmem:[%s2635_s22 + $0x10] sm:$0xff]  ;;  %v350_v61 = vld [vmem:[%s2635_s22 + $0x8] sm:$0xff] }
  0x2d   : > { %370 = vmatpush.msra.mxu0 %v2658_v5  ;;  %v2698_v23 = vand.u32 4294901760, %v2675_v15  ;;  %v2701_v24 = vand.u32 4294901760, %v2678_v16  ;;  %v2704_v25 = vand.u32 4294901760, %v2681_v17  ;;  %511 = vmatpush.msra.mxu2 %v2675_v15  ;;  %v2713_v29 = vand.u32 4294901760, %v356_v19  ;;  %v349_v2 = vld [vmem:[%s2635_s22] sm:$0xff] }
  0x2e   : > { %v2711_v28 = vand.u32 4294901760, %v2688_v20  ;;  %v2716_v30 = vsub.f32 %v358_v13, %v2683_v18  ;;  %566 = vmatpush.msra.mxu3 %v2658_v5  ;;  %v2727_v34 = vand.u32 4294901760, %v2691_v21  ;;  %v2731_v35 = vand.u32 4294901760, %v2694_v22  ;;  %v366_v8 = vld [vmem:[%s2650_s1] sm:$0xff] }
  0x2f   : > { %372 = vmatpush.msra.mxu0 %v2660_v6  ;;  %v411_v31 = vsub.f32 %v2675_v15, %v2698_v23  ;;  %v417_v32 = vsub.f32 %v2678_v16, %v2701_v24  ;;  %v423_v33 = vsub.f32 %v2681_v17, %v2704_v25  ;;  %514 = vmatpush.msra.mxu2 %v2678_v16  ;;  %v2733_v36 = vand.u32 4294901760, %v355_v27 }
  0x30   : > { %568 = vmatpush.msra.mxu3 %v2660_v6  ;;  %v429_v40 = vsub.f32 %v2688_v20, %v2711_v28  ;;  %v2745_v41 = vsub.f32 %v357_v14, %v2706_v26  ;;  %v2749_v42 = vand.u32 4294901760, %v2716_v30  ;;  %v435_v45 = vsub.f32 %v2691_v21, %v2727_v34 }
  0x31   : > { %v2737_v38 = vand.u32 4294901760, %v411_v31  ;;  %374 = vmatpush.msra.mxu0 %v2665_v10  ;;  %v2740_v39 = vand.u32 4294901760, %v417_v32  ;;  %517 = vmatpush.msra.mxu2 %v2681_v17  ;;  %v2755_v44 = vand.u32 4294901760, %v423_v33  ;;  %v2759_v46 = vand.u32 4294901760, %v354_v37 }
  0x32   : > { %3310 = vst [vmem:[#allocation6_spill] sm:$0xff] %v2745_v41  ;;  %570 = vmatpush.msra.mxu3 %v2665_v10  ;;  %v2762_v47 = vsub.f32 %v356_v19, %v2713_v29  ;;  %v441_v49 = vsub.f32 %v2694_v22, %v2731_v35  ;;  %v2771_v50 = vand.u32 4294901760, %v429_v40  ;;  %v2774_v51 = vand.u32 4294901760, %v2745_v41 }
  0x33   : > { %413 = vmatpush.msra.mxu1 %v2737_v38  ;;  %376 = vmatpush.msra.mxu0 %v2667_v11  ;;  %v2776_v52 = vand.u32 4294901760, %v353_v43  ;;  %v2779_v53 = vsub.f32 %v355_v27, %v2733_v36  ;;  %v447_v54 = vsub.f32 %v2716_v30, %v2749_v42  ;;  %v2783_v55 = vand.u32 4294901760, %v352_v48 }
  0x34   : > { %3311 = vst [vmem:[#allocation7_spill] sm:$0xff] %v2762_v47  ;;  %520 = vmatpush.msra.mxu2 %v2688_v20  ;;  %572 = vmatpush.msra.mxu3 %v2667_v11  ;;  %v2790_v57 = vand.u32 4294901760, %v435_v45  ;;  %v2793_v58 = vand.u32 4294901760, %v2762_v47  ;;  %v2796_v59 = vsub.f32 %v354_v37, %v2759_v46  ;;  %v2798_v60 = vand.u32 4294901760, %v441_v49 }
  0x35   : > { %419 = vmatpush.msra.mxu1 %v2740_v39  ;;  %378 = vmatpush.msra.mxu0 %v2669_v12  ;;  %3312 = vst [vmem:[#allocation8_spill] sm:$0xff] %v2779_v53  ;;  %v453_v62 = vsub.f32 %v2745_v41, %v2774_v51  ;;  %v2808_v63 = vand.u32 4294901760, %v2779_v53  ;;  %v2810_v0 = vand.u32 4294901760, %v351_v56  ;;  %v2813_v1 = vsub.f32 %v353_v43, %v2776_v52 }
  0x36   : > { %523 = vmatpush.msra.mxu2 %v2691_v21  ;;  %574 = vmatpush.msra.mxu3 %v2669_v12  ;;  %3313 = vst [vmem:[#allocation9_spill] sm:$0xff] %v2793_v58  ;;  %v2816_v3 = vand.u32 4294901760, %v447_v54  ;;  %v2819_v7 = vsub.f32 %v352_v48, %v2783_v55  ;;  %v459_v9 = vsub.f32 %v2762_v47, %v2793_v58  ;;  %v2829_v13 = vand.u32 4294901760, %v2796_v59 }
  0x37   : > { %425 = vmatpush.msra.mxu1 %v2755_v44  ;;  %380 = vmatpush.msra.mxu0 %v2683_v18  ;;  %3314 = vst [vmem:[#allocation10_spill] sm:$0xff] %v2796_v59  ;;  %v2831_v14 = vand.u32 4294901760, %v350_v61  ;;  %v2833_v19 = vand.u32 4294901760, %v366_v8  ;;  %v2835_v27 = vand.u32 4294901760, %v349_v2  ;;  %v2841_v31 = vand.u32 4294901760, %v453_v62 }
  0x38   : > { %526 = vmatpush.msra.mxu2 %v2694_v22  ;;  %576 = vmatpush.msra.mxu3 %v2683_v18  ;;  %3315 = vst [vmem:[#allocation11_spill] sm:$0xff] %v2808_v63  ;;  %v465_v32 = vsub.f32 %v2779_v53, %v2808_v63  ;;  %v2846_v33 = vand.u32 4294901760, %v2813_v1  ;;  %v2849_v37 = vsub.f32 %v351_v56, %v2810_v0  ;;  %v2852_v40 = vand.u32 4294901760, %v2819_v7 }
  0x39   : > { %431 = vmatpush.msra.mxu1 %v2771_v50  ;;  %382 = vmatpush.msra.mxu0 %v2706_v26  ;;  %3316 = vst [vmem:[#allocation12_spill] sm:$0xff] %v2813_v1  ;;  %v2858_v43 = vand.u32 4294901760, %v459_v9  ;;  %v471_v45 = vsub.f32 %v2796_v59, %v2829_v13  ;;  %v2863_v48 = vsub.f32 %v350_v61, %v2831_v14 }
  0x3a   : > { %3317 = vst [vmem:[#allocation13_spill] sm:$0xff] %v2819_v7  ;;  %529 = vmatpush.msra.mxu2 %v2716_v30  ;;  %578 = vmatpush.msra.mxu3 %v2706_v26  ;;  %v400_v49 = vsub.f32 %v366_v8, %v2833_v19  ;;  %v2870_v54 = vand.u32 4294901760, %v465_v32  ;;  %v477_v56 = vsub.f32 %v2813_v1, %v2846_v33  ;;  %v2875_v62 = vand.u32 4294901760, %v2849_v37 }
  0x3b   : > { %437 = vmatpush.msra.mxu1 %v2790_v57  ;;  %384 = vmatpush.msra.mxu0 %v2713_v29  ;;  %3318 = vst [vmem:[#allocation14_spill] sm:$0xff] %v2829_v13  ;;  %v2878_v61 = vsub.f32 %v349_v2, %v2835_v27  ;;  %v2884_v8 = vand.u32 4294901760, %v471_v45  ;;  %v483_v9 = vsub.f32 %v2819_v7, %v2852_v40  ;;  %v2889_v32 = vand.u32 4294901760, %v2863_v48 }
  0x3c   : > { %532 = vmatpush.msra.mxu2 %v2745_v41  ;;  %580 = vmatpush.msra.mxu3 %v2713_v29  ;;  %3319 = vst [vmem:[#allocation15_spill] sm:$0xff] %v2846_v33  ;;  %v2895_v2 = vand.u32 4294901760, %v477_v56  ;;  %v489_v45 = vsub.f32 %v2849_v37, %v2875_v62 }
  0x3d   : > { %443 = vmatpush.msra.mxu1 %v2798_v60  ;;  %386 = vmatpush.msra.mxu0 %v2733_v36  ;;  %3320 = vst [vmem:[#allocation16_spill] sm:$0xff] %v2849_v37  ;;  %v495_v56 = vsub.f32 %v2863_v48, %v2889_v32 }
  0x3e   : > { %3321 = vst [vmem:[#allocation17_spill] sm:$0xff] %v2852_v40  ;;  %535 = vmatpush.msra.mxu2 %v2762_v47  ;;  %582 = vmatpush.msra.mxu3 %v2733_v36 }
  0x3f   : > { %449 = vmatpush.msra.mxu1 %v2816_v3  ;;  %388 = vmatpush.msra.mxu0 %v2759_v46  ;;  %3322 = vst [vmem:[#allocation18_spill] sm:$0xff] %v2863_v48 }
  0x40   : > { %538 = vmatpush.msra.mxu2 %v2779_v53  ;;  %584 = vmatpush.msra.mxu3 %v2759_v46  ;;  %3323 = vst [vmem:[#allocation19_spill] sm:$0xff] %v2875_v62  ;;  %v401_v53 = vand.u32 4294901760, %v400_v49 }
  0x41   : > { %455 = vmatpush.msra.mxu1 %v2841_v31  ;;  %390 = vmatpush.msra.mxu0 %v2776_v52  ;;  %3324 = vst [vmem:[#allocation20_spill] sm:$0xff] %v2878_v61 }
  0x42   : > { %541 = vmatpush.msra.mxu2 %v2796_v59  ;;  %586 = vmatpush.msra.mxu3 %v2776_v52  ;;  %3325 = vst [vmem:[#allocation21_spill] sm:$0xff] %v2889_v32  ;;  %v2900_v59 = vand.u32 4294901760, %v2878_v61  ;;  %v402_v47 = vsub.f32 %v400_v49, %v401_v53 }
  0x43   : > { %461 = vmatpush.msra.mxu1 %v2858_v43  ;;  %392 = vmatpush.msra.mxu0 %v2783_v55 }
  0x44   : > { %544 = vmatpush.msra.mxu2 %v2813_v1  ;;  %588 = vmatpush.msra.mxu3 %v2783_v55  ;;  %3326 = vst [vmem:[#allocation22_spill] sm:$0xff] %v2900_v59  ;;  %v2906_v1 = vand.u32 4294901760, %v483_v9  ;;  %v501_v41 = vsub.f32 %v2878_v61, %v2900_v59  ;;  %v2921_v9 = vand.u32 4294901760, %v495_v56 }
  0x45   : > { %467 = vmatpush.msra.mxu1 %v2870_v54  ;;  %394 = vmatpush.msra.mxu0 %v2810_v0 }
  0x46   : > { %547 = vmatpush.msra.mxu2 %v2819_v7  ;;  %590 = vmatpush.msra.mxu3 %v2810_v0  ;;  %v2914_v7 = vand.u32 4294901760, %v489_v45  ;;  %v2927_v45 = vand.u32 4294901760, %v501_v41  ;;  %v348_v41 = vld [vmem:[%s2630_s19] sm:$0xff] }
  0x47   : > { %473 = vmatpush.msra.mxu1 %v2884_v8  ;;  %396 = vmatpush.msra.mxu0 %v2831_v14 }
  0x48   : > { %550 = vmatpush.msra.mxu2 %v2849_v37  ;;  %592 = vmatpush.msra.mxu3 %v2831_v14  ;;  %v403_v37 = vand.u32 4294901760, %v402_v47  ;;  %v710_v47 = vsel %vm708_vm0, %v348_v41, 0 }
  0x49   : > { %479 = vmatpush.msra.mxu1 %v2895_v2  ;;  %398 = vmatpush.msra.mxu0 %v2835_v27 }
  0x4a   : > { %553 = vmatpush.msra.mxu2 %v2863_v48  ;;  %594 = vmatpush.msra.mxu3 %v2835_v27 }
  0x4b   : > { %605 = vmatpush.msrb.mxu0 %v2698_v23  ;;  %485 = vmatpush.msra.mxu1 %v2906_v1 }
  0x4c   : > { %556 = vmatpush.msra.mxu2 %v2878_v61  ;;  %598 = vmatmul.f32.vlgmr.msra.gmra.mxu3 %v401_v53 }
  0x4d   : > { %609 = vmatpush.msrb.mxu0 %v2701_v24  ;;  %491 = vmatpush.msra.mxu1 %v2914_v7 }
  0x4e   : > { %559 = vmatmul.f32.vlgmr.msra.gmra.mxu2 %v400_v49  ;;  %404 = vmatmul.f32.vlgmr.msra.gmra.mxu0 %v403_v37  ;;  %v2966_v49 = vand.u32 4294901760, %v710_v47 }
  0x4f   : > { %613 = vmatpush.msrb.mxu0 %v2704_v25  ;;  %497 = vmatpush.msra.mxu1 %v2921_v9 }
  0x51   : > { %617 = vmatpush.msrb.mxu0 %v2711_v28  ;;  %503 = vmatpush.msra.mxu1 %v2927_v45 }
  0x52   : > { %505 = vmatmul.f32.vlgmr.msra.gmra.mxu1 %v2833_v19 }
  0x53   : > { %672 = vmatpush.msrb.mxu1 %v2656_v4  ;;  %621 = vmatpush.msrb.mxu0 %v2727_v34 }
  0x55   : > { %674 = vmatpush.msrb.mxu1 %v2658_v5  ;;  %625 = vmatpush.msrb.mxu0 %v2731_v35 }
  0x57   : > { %676 = vmatpush.msrb.mxu1 %v2660_v6  ;;  %629 = vmatpush.msrb.mxu0 %v2749_v42 }
  0x59   : > { %678 = vmatpush.msrb.mxu1 %v2665_v10  ;;  %633 = vmatpush.msrb.mxu0 %v2774_v51 }
  0x5b   : > { %680 = vmatpush.msrb.mxu1 %v2667_v11  ;;  %637 = vmatpush.msrb.mxu0 %v2793_v58 }
  0x5d   : > { %682 = vmatpush.msrb.mxu1 %v2669_v12  ;;  %641 = vmatpush.msrb.mxu0 %v2808_v63 }
  0x5f   : > { %684 = vmatpush.msrb.mxu1 %v2683_v18  ;;  %645 = vmatpush.msrb.mxu0 %v2829_v13 }
  0x61   : > { %686 = vmatpush.msrb.mxu1 %v2706_v26  ;;  %649 = vmatpush.msrb.mxu0 %v2846_v33 }
  0x63   : > { %688 = vmatpush.msrb.mxu1 %v2713_v29  ;;  %653 = vmatpush.msrb.mxu0 %v2852_v40 }
  0x65   : > { %690 = vmatpush.msrb.mxu1 %v2733_v36  ;;  %657 = vmatpush.msrb.mxu0 %v2875_v62 }
  0x67   : > { %692 = vmatpush.msrb.mxu1 %v2759_v46  ;;  %661 = vmatpush.msrb.mxu0 %v2889_v32 }
  0x69   : > { %694 = vmatpush.msrb.mxu1 %v2776_v52  ;;  %665 = vmatpush.msrb.mxu0 %v2900_v59  ;;  %v2969_v59 = vsub.f32 %v710_v47, %v2966_v49 }
  0x6a   : > { %667 = vmatmul.f32.vlgmr.msrb.gmra.mxu0 %v2833_v19 }
  0x6b   : > { %696 = vmatpush.msrb.mxu1 %v2783_v55  ;;  %3327 = vst [vmem:[#allocation23_spill] sm:$0xff] %v2969_v59  ;;  %v2972_v62 = vand.u32 4294901760, %v2969_v59 }
  0x6d   : > { %698 = vmatpush.msrb.mxu1 %v2810_v0  ;;  %3328 = vst [vmem:[#allocation24_spill] sm:$0xff] %v2972_v62  ;;  %v732_v33 = vsub.f32 %v2969_v59, %v2972_v62 }
  0x6f   : > { %700 = vmatpush.msrb.mxu1 %v2831_v14  ;;  %v2976_v58 = vand.u32 4294901760, %v732_v33 }
  0x71   : > { %702 = vmatpush.msrb.mxu1 %v2835_v27 }
  0x72   : > { %704 = vmatmul.f32.vlgmr.msrb.gmra.mxu1 %v2833_v19 }
  0xcb   : > { %v405_v37 = vpop.f32.mrf.mxu0 }
  0xcf   : > { %v506_v53 = vpop.f32.mrf.mxu1  ;;  %v599_v32 = vpop.f32.mrf.mxu3 }
  0xd0   : > { %v507_v56 = vadd.f32 %v506_v53, %v405_v37 }
  0xd1   : > { %v560_v61 = vpop.f32.mrf.mxu2 }
  0xd2   : > { %v561_v48 = vadd.f32 %v560_v61, %v507_v56 }
  0xd4   : > { %v600_v40 = vadd.f32 %v599_v32, %v561_v48 }
  0xe7   : > { %v668_v19 = vpop.f32.mrf.mxu0 }
  0xe8   : > { %v669_v41 = vadd.f32 %v668_v19, %v600_v40 }
  0xef   : > { %v705_v13 = vpop.f32.mrf.mxu1 }
  0xf0   : > { %v706_v63 = vadd.f32 %v705_v13, %v669_v41 }
  0xf2   : > { %v727_v53 = vand.u32 4294901760, %v706_v63 }
  0xf4   : > { %v754_v37 = vsub.f32 %v706_v63, %v727_v53  ;;  %728 = vmatpush.msrb.mxu2 %v727_v53  ;;  %v365_v63 = vld [vmem:[%s2640_s9] sm:$0xff] }
  0xf5   : > { %734 = vmatmul.f32.vlgmr.msrb.gmra.mxu2 %v2976_v58  ;;  %v2985_v13 = vand.u32 4294901760, %v365_v63 }
  0xf6   : > { %v755_v61 = vand.u32 4294901760, %v754_v37  ;;  %781 = vmatpush.msra.mxu2 %v754_v37 }
  0xf7   : > { %v2988_v33 = vsub.f32 %v365_v63, %v2985_v13  ;;  %954 = vmatpush.msra.mxu1 %v2985_v13 }
  0xf8   : > { %830 = vmatpush.msrb.mxu2 %v755_v61  ;;  %v756_v47 = vsub.f32 %v754_v37, %v755_v61 }
  0xf9   : > { %3329 = vst [vmem:[#allocation25_spill] sm:$0xff] %v2988_v33  ;;  %1058 = vmatpush.msrb.mxu1 %v2737_v38  ;;  %931 = vmatpush.msra.mxu0 %v2988_v33  ;;  %v3003_v40 = vand.u32 4294901760, %v2988_v33 }
  0xfa   : > { %v757_v48 = vand.u32 4294901760, %v756_v47 }
  0xfb   : > { %1013 = vmatpush.msrb.mxu0 %v2656_v4  ;;  %1064 = vmatpush.msrb.mxu1 %v2740_v39  ;;  %3330 = vst [vmem:[#allocation26_spill] sm:$0xff] %v3003_v40  ;;  %v906_v32 = vsub.f32 %v2988_v33, %v3003_v40 }
  0xfc   : > { %758 = vmatpush.msrb.mxu3 %v757_v48 }
  0xfd   : > { %760 = vmatmul.f32.vlgmr.msrb.gmra.mxu3 %v2966_v49  ;;  %784 = vmatmul.f32.vlgmr.msra.gmra.mxu2 %v2969_v59  ;;  %v3011_v56 = vand.u32 4294901760, %v906_v32 }
  0xfe   : > { %804 = vmatpush.msra.mxu3 %v727_v53  ;;  %878 = vmatpush.msra.mxu2 %v2985_v13 }
  0xff   : > { %1015 = vmatpush.msrb.mxu0 %v2658_v5  ;;  %1070 = vmatpush.msrb.mxu1 %v2755_v44  ;;  %3331 = vst [vmem:[#allocation27_spill] sm:$0xff] %v3011_v56 }
 0x100   : > { %852 = vmatpush.msrb.mxu3 %v727_v53 }
 0x101   : > { %1017 = vmatpush.msrb.mxu0 %v2660_v6  ;;  %1076 = vmatpush.msrb.mxu1 %v2771_v50 }
 0x103   : > { %1019 = vmatpush.msrb.mxu0 %v2665_v10  ;;  %1082 = vmatpush.msrb.mxu1 %v2790_v57 }
 0x105   : > { %808 = vmatmul.f32.vlgmr.msra.gmra.mxu3 %v2972_v62  ;;  %832 = vmatmul.f32.vlgmr.msrb.gmra.mxu2 %v2966_v49 }
 0x106   : > { %1021 = vmatpush.msrb.mxu0 %v2667_v11  ;;  %1088 = vmatpush.msrb.mxu1 %v2798_v60 }
 0x107   : > { %980 = vmatpush.msrb.mxu2 %v3003_v40  ;;  %908 = vmatpush.msra.mxu3 %v3011_v56 }
 0x108   : > { %1023 = vmatpush.msrb.mxu0 %v2669_v12  ;;  %1094 = vmatpush.msrb.mxu1 %v2816_v3 }
 0x10a   : > { %1025 = vmatpush.msrb.mxu0 %v2683_v18  ;;  %1100 = vmatpush.msrb.mxu1 %v2841_v31 }
 0x10c   : > { %1027 = vmatpush.msrb.mxu0 %v2706_v26  ;;  %1106 = vmatpush.msrb.mxu1 %v2858_v43 }
 0x10d   : > { %854 = vmatmul.f32.vlgmr.msrb.gmra.mxu3 %v2966_v49 }
 0x10e   : > { %1002 = vmatpush.msrb.mxu3 %v2985_v13  ;;  %1029 = vmatpush.msrb.mxu0 %v2713_v29 }
 0x10f   : > { %1112 = vmatpush.msrb.mxu1 %v2870_v54 }
 0x110   : > { %1031 = vmatpush.msrb.mxu0 %v2733_v36 }
 0x111   : > { %1118 = vmatpush.msrb.mxu1 %v2884_v8 }
 0x112   : > { %1033 = vmatpush.msrb.mxu0 %v2759_v46 }
 0x113   : > { %1124 = vmatpush.msrb.mxu1 %v2895_v2 }
 0x114   : > { %1035 = vmatpush.msrb.mxu0 %v2776_v52 }
 0x115   : > { %1130 = vmatpush.msrb.mxu1 %v2906_v1 }
 0x116   : > { %1037 = vmatpush.msrb.mxu0 %v2783_v55 }
 0x117   : > { %1136 = vmatpush.msrb.mxu1 %v2914_v7 }
 0x118   : > { %1039 = vmatpush.msrb.mxu0 %v2810_v0 }
 0x119   : > { %1142 = vmatpush.msrb.mxu1 %v2921_v9 }
 0x11a   : > { %1041 = vmatpush.msrb.mxu0 %v2831_v14 }
 0x11b   : > { %1148 = vmatpush.msrb.mxu1 %v2927_v45 }
 0x11c   : > { %1043 = vmatpush.msrb.mxu0 %v2835_v27 }
 0x178   : > { %v735_v19 = vpop.f32.mrf.mxu2 }
 0x180   : > { %v761_v41 = vpop.f32.mrf.mxu3  ;;  %v785_v53 = vpop.f32.mrf.mxu2 }
 0x181   : > { %v762_v37 = vadd.f32 %v761_v41, %v735_v19 }
 0x183   : > { %v786_v47 = vadd.f32 %v785_v53, %v762_v37 }
 0x188   : > { %v809_v61 = vpop.f32.mrf.mxu3  ;;  %v833_v63 = vpop.f32.mrf.mxu2 }
 0x189   : > { %v810_v48 = vadd.f32 %v809_v61, %v786_v47 }
 0x18b   : > { %v834_v32 = vadd.f32 %v833_v63, %v810_v48  ;;  %v3333_v48 = vld [vmem:[#allocation6_spill] sm:$0xff]  ;;  %v3334_v63 = vld [vmem:[#allocation11_spill] sm:$0xff] }
 0x190   : > { %v855_v40 = vpop.f32.mrf.mxu3 }
 0x191   : > { %v856_v56 = vadd.f32 %v855_v40, %v834_v32  ;;  %v3335_v32 = vld [vmem:[#allocation7_spill] sm:$0xff] }
 0x193   : > { %v860_v62 = vsel %vm708_vm0, %v856_v56, 0 }
 0x194   : > { %v879_v59 = vand.u32 4294901760, %v860_v62 }
 0x196   : > { %v880_v19 = vsub.f32 %v860_v62, %v879_v59  ;;  %910 = vmatmul.f32.vlgmr.msra.gmra.mxu3 %v879_v59  ;;  %v2444_v62 = vld [vmem:[%s2650_s1 + $0x8] sm:$0xff] }
 0x197   : > { %1209 = vmatpush.msra.mxu3 %v2656_v4  ;;  %v3049_v56 = vand.u32 4294901760, %v2444_v62 }
 0x198   : > { %934 = vmatmul.f32.vlgmr.msra.gmra.mxu0 %v880_v19  ;;  %v881_v41 = vand.u32 4294901760, %v880_v19 }
 0x199   : > { %1211 = vmatpush.msra.mxu3 %v2658_v5  ;;  %1250 = vmatpush.msra.mxu0 %v2698_v23  ;;  %v1045_v37 = vsub.f32 %v2444_v62, %v3049_v56  ;;  %v3339_v62 = vld [vmem:[#allocation10_spill] sm:$0xff] }
 0x19a   : > { %958 = vmatmul.f32.vlgmr.msra.gmra.mxu1 %v881_v41  ;;  %v882_v53 = vsub.f32 %v880_v19, %v881_v41  ;;  %v3336_v19 = vld [vmem:[#allocation14_spill] sm:$0xff] }
 0x19b   : > { %1213 = vmatpush.msra.mxu3 %v2660_v6  ;;  %1254 = vmatpush.msra.mxu0 %v2701_v24  ;;  %v1046_v61 = vand.u32 4294901760, %v1045_v37 }
 0x19c   : > { %v883_v40 = vand.u32 4294901760, %v882_v53  ;;  %1317 = vmatpush.msra.mxu1 %v2656_v4  ;;  %v3337_v53 = vld [vmem:[#allocation8_spill] sm:$0xff] }
 0x19d   : > { %1215 = vmatpush.msra.mxu3 %v2665_v10  ;;  %1258 = vmatpush.msra.mxu0 %v2704_v25  ;;  %v1047_v47 = vsub.f32 %v1045_v37, %v1046_v61 }
 0x19e   : > { %884 = vmatmul.f32.vlgmr.msra.gmra.mxu2 %v883_v40  ;;  %1004 = vmatmul.f32.vlgmr.msrb.gmra.mxu3 %v879_v59  ;;  %v3338_v40 = vld [vmem:[#allocation15_spill] sm:$0xff] }
 0x19f   : > { %1156 = vmatpush.msra.mxu2 %v2675_v15  ;;  %1217 = vmatpush.msra.mxu3 %v2667_v11  ;;  %v1048_v41 = vand.u32 4294901760, %v1047_v47  ;;  %v3341_v47 = vld [vmem:[#allocation17_spill] sm:$0xff] }
 0x1a0   : > { %1319 = vmatpush.msra.mxu1 %v2658_v5  ;;  %1262 = vmatpush.msra.mxu0 %v2711_v28 }
 0x1a1   : > { %1159 = vmatpush.msra.mxu2 %v2678_v16  ;;  %1219 = vmatpush.msra.mxu3 %v2669_v12 }
 0x1a2   : > { %1321 = vmatpush.msra.mxu1 %v2660_v6  ;;  %1266 = vmatpush.msra.mxu0 %v2727_v34 }
 0x1a3   : > { %1162 = vmatpush.msra.mxu2 %v2681_v17  ;;  %1221 = vmatpush.msra.mxu3 %v2683_v18 }
 0x1a4   : > { %1323 = vmatpush.msra.mxu1 %v2665_v10  ;;  %1270 = vmatpush.msra.mxu0 %v2731_v35 }
 0x1a5   : > { %1165 = vmatpush.msra.mxu2 %v2688_v20  ;;  %1223 = vmatpush.msra.mxu3 %v2706_v26 }
 0x1a6   : > { %982 = vmatmul.f32.vlgmr.msrb.gmra.mxu2 %v879_v59  ;;  %1325 = vmatpush.msra.mxu1 %v2667_v11  ;;  %v3332_v59 = vld [vmem:[#allocation9_spill] sm:$0xff] }
 0x1a7   : > { %1168 = vmatpush.msra.mxu2 %v2691_v21  ;;  %1225 = vmatpush.msra.mxu3 %v2713_v29 }
 0x1a8   : > { %1274 = vmatpush.msra.mxu0 %v2749_v42  ;;  %1327 = vmatpush.msra.mxu1 %v2669_v12 }
 0x1a9   : > { %1171 = vmatpush.msra.mxu2 %v2694_v22  ;;  %1227 = vmatpush.msra.mxu3 %v2733_v36 }
 0x1aa   : > { %1278 = vmatpush.msra.mxu0 %v2774_v51  ;;  %1329 = vmatpush.msra.mxu1 %v2683_v18 }
 0x1ab   : > { %1174 = vmatpush.msra.mxu2 %v2716_v30  ;;  %1229 = vmatpush.msra.mxu3 %v2759_v46 }
 0x1ac   : > { %1282 = vmatpush.msra.mxu0 %v3332_v59  ;;  %1331 = vmatpush.msra.mxu1 %v2706_v26 }
 0x1ad   : > { %1177 = vmatpush.msra.mxu2 %v3333_v48  ;;  %1231 = vmatpush.msra.mxu3 %v2776_v52 }
 0x1ae   : > { %1286 = vmatpush.msra.mxu0 %v3334_v63  ;;  %1333 = vmatpush.msra.mxu1 %v2713_v29 }
 0x1af   : > { %1180 = vmatpush.msra.mxu2 %v3335_v32  ;;  %1233 = vmatpush.msra.mxu3 %v2783_v55  ;;  %v3340_v32 = vld [vmem:[#allocation12_spill] sm:$0xff] }
 0x1b0   : > { %1290 = vmatpush.msra.mxu0 %v3336_v19  ;;  %1335 = vmatpush.msra.mxu1 %v2733_v36  ;;  %v3344_v19 = vld [vmem:[#allocation16_spill] sm:$0xff] }
 0x1b1   : > { %1183 = vmatpush.msra.mxu2 %v3337_v53  ;;  %1235 = vmatpush.msra.mxu3 %v2810_v0  ;;  %v3342_v53 = vld [vmem:[#allocation13_spill] sm:$0xff] }
 0x1b2   : > { %1294 = vmatpush.msra.mxu0 %v3338_v40  ;;  %1337 = vmatpush.msra.mxu1 %v2759_v46  ;;  %v3343_v40 = vld [vmem:[#allocation19_spill] sm:$0xff] }
 0x1b3   : > { %1186 = vmatpush.msra.mxu2 %v3339_v62  ;;  %1237 = vmatpush.msra.mxu3 %v2831_v14  ;;  %v3346_v62 = vld [vmem:[#allocation18_spill] sm:$0xff] }
 0x1b4   : > { %1049 = vmatmul.f32.vlgmr.msrb.gmra.mxu0 %v1048_v41  ;;  %1150 = vmatmul.f32.vlgmr.msrb.gmra.mxu1 %v3049_v56  ;;  %v3345_v41 = vld [vmem:[#allocation21_spill] sm:$0xff] }
 0x1b5   : > { %1189 = vmatpush.msra.mxu2 %v3340_v32  ;;  %1239 = vmatpush.msra.mxu3 %v2835_v27  ;;  %v3347_v32 = vld [vmem:[#allocation22_spill] sm:$0xff] }
 0x1b6   : > { %1243 = vmatmul.f32.vlgmr.msra.gmra.mxu3 %v1046_v61  ;;  %1298 = vmatpush.msra.mxu0 %v3341_v47  ;;  %v3348_v61 = vld [vmem:[#allocation20_spill] sm:$0xff] }
 0x1b7   : > { %1192 = vmatpush.msra.mxu2 %v3342_v53  ;;  %1339 = vmatpush.msra.mxu1 %v2776_v52 }
 0x1b8   : > { %1302 = vmatpush.msra.mxu0 %v3343_v40 }
 0x1b9   : > { %1195 = vmatpush.msra.mxu2 %v3344_v19  ;;  %1341 = vmatpush.msra.mxu1 %v2783_v55 }
 0x1ba   : > { %1306 = vmatpush.msra.mxu0 %v3345_v41 }
 0x1bb   : > { %1198 = vmatpush.msra.mxu2 %v3346_v62  ;;  %1343 = vmatpush.msra.mxu1 %v2810_v0 }
 0x1bc   : > { %1310 = vmatpush.msra.mxu0 %v3347_v32 }
 0x1bd   : > { %1201 = vmatpush.msra.mxu2 %v3348_v61  ;;  %1345 = vmatpush.msra.mxu1 %v2831_v14 }
 0x1be   : > { %1204 = vmatmul.f32.vlgmr.msra.gmra.mxu2 %v1045_v37  ;;  %1312 = vmatmul.f32.vlgmr.msra.gmra.mxu0 %v3049_v56 }
 0x1bf   : > { %1347 = vmatpush.msra.mxu1 %v2835_v27  ;;  %1573 = vmatpush.msrb.mxu0 %v2988_v33 }
 0x1c0   : > { %1349 = vmatmul.f32.vlgmr.msra.gmra.mxu1 %v3049_v56 }
 0x1c1   : > { %1655 = vmatpush.msra.mxu0 %v2656_v4  ;;  %1596 = vmatpush.msrb.mxu1 %v2985_v13 }
 0x1c3   : > { %1657 = vmatpush.msra.mxu0 %v2658_v5  ;;  %1700 = vmatpush.msra.mxu1 %v2737_v38 }
 0x1c5   : > { %1659 = vmatpush.msra.mxu0 %v2660_v6  ;;  %1706 = vmatpush.msra.mxu1 %v2740_v39 }
 0x1c7   : > { %1661 = vmatpush.msra.mxu0 %v2665_v10  ;;  %1712 = vmatpush.msra.mxu1 %v2755_v44 }
 0x1c9   : > { %1663 = vmatpush.msra.mxu0 %v2667_v11  ;;  %1718 = vmatpush.msra.mxu1 %v2771_v50 }
 0x1cb   : > { %1665 = vmatpush.msra.mxu0 %v2669_v12  ;;  %1724 = vmatpush.msra.mxu1 %v2790_v57 }
 0x1cd   : > { %1667 = vmatpush.msra.mxu0 %v2683_v18  ;;  %1730 = vmatpush.msra.mxu1 %v2798_v60 }
 0x1cf   : > { %1669 = vmatpush.msra.mxu0 %v2706_v26  ;;  %1736 = vmatpush.msra.mxu1 %v2816_v3 }
 0x1d1   : > { %1671 = vmatpush.msra.mxu0 %v2713_v29  ;;  %1742 = vmatpush.msra.mxu1 %v2841_v31 }
 0x1d3   : > { %1673 = vmatpush.msra.mxu0 %v2733_v36  ;;  %1748 = vmatpush.msra.mxu1 %v2858_v43 }
 0x1d5   : > { %1675 = vmatpush.msra.mxu0 %v2759_v46  ;;  %1754 = vmatpush.msra.mxu1 %v2870_v54  ;;  %v858_v54 = vld [vmem:[#allocation2 + $0x10] sm:$0xff] }
 0x1d7   : > { %1677 = vmatpush.msra.mxu0 %v2776_v52  ;;  %1760 = vmatpush.msra.mxu1 %v2884_v8 }
 0x1d9   : > { %1679 = vmatpush.msra.mxu0 %v2783_v55  ;;  %1766 = vmatpush.msra.mxu1 %v2895_v2 }
 0x1db   : > { %1681 = vmatpush.msra.mxu0 %v2810_v0  ;;  %1772 = vmatpush.msra.mxu1 %v2906_v1 }
 0x1dd   : > { %1683 = vmatpush.msra.mxu0 %v2831_v14  ;;  %1778 = vmatpush.msra.mxu1 %v2914_v7 }
 0x1df   : > { %1685 = vmatpush.msra.mxu0 %v2835_v27  ;;  %1784 = vmatpush.msra.mxu1 %v2921_v9 }
 0x1e1   : > { %1790 = vmatpush.msra.mxu1 %v2927_v45 }
 0x215   : > { %v935_v50 = vpop.f32.mrf.mxu0 }
 0x217   : > { %v959_v60 = vpop.f32.mrf.mxu1 }
 0x219   : > { %v911_v38 = vpop.f32.mrf.mxu3 }
 0x221   : > { %v885_v39 = vpop.f32.mrf.mxu2  ;;  %v1005_v1 = vpop.f32.mrf.mxu3 }
 0x222   : > { %v912_v44 = vadd.f32 %v911_v38, %v885_v39 }
 0x224   : > { %v936_v57 = vadd.f32 %v935_v50, %v912_v44 }
 0x226   : > { %v960_v3 = vadd.f32 %v959_v60, %v936_v57 }
 0x229   : > { %v983_v31 = vpop.f32.mrf.mxu2 }
 0x22a   : > { %v984_v43 = vadd.f32 %v983_v31, %v960_v3 }
 0x22c   : > { %v1006_v8 = vadd.f32 %v1005_v1, %v984_v43  ;;  %v3349_v43 = vld [vmem:[#allocation23_spill] sm:$0xff] }
 0x22e   : > { %v1008_v2 = vadd.f32 %v1006_v8, %v858_v54 }
 0x230   : > { %1009 = vst [vmem:[#allocation2 + $0x10] sm:$0xff] %v1008_v2 }
 0x231   : > { %v1050_v7 = vpop.f32.mrf.mxu0  ;;  %v1151_v56 = vpop.f32.mrf.mxu1 }
 0x232   : > { %v1152_v37 = vadd.f32 %v1151_v56, %v1050_v7 }
 0x239   : > { %v1244_v33 = vpop.f32.mrf.mxu3 }
 0x23b   : > { %v1313_v61 = vpop.f32.mrf.mxu0 }
 0x23d   : > { %v1350_v38 = vpop.f32.mrf.mxu1 }
 0x241   : > { %v1205_v9 = vpop.f32.mrf.mxu2 }
 0x242   : > { %v1206_v45 = vadd.f32 %v1205_v9, %v1152_v37 }
 0x244   : > { %v1245_v32 = vadd.f32 %v1244_v33, %v1206_v45  ;;  %v3350_v33 = vld [vmem:[#allocation24_spill] sm:$0xff] }
 0x246   : > { %v1314_v39 = vadd.f32 %v1313_v61, %v1245_v32  ;;  %v3351_v32 = vld [vmem:[#allocation27_spill] sm:$0xff]  ;;  %v3352_v61 = vld [vmem:[#allocation26_spill] sm:$0xff] }
 0x248   : > { %v1351_v44 = vadd.f32 %v1350_v38, %v1314_v39 }
 0x24a   : > { %v1368_v50 = vand.u32 4294901760, %v1351_v44 }
 0x24c   : > { %v1395_v57 = vsub.f32 %v1351_v44, %v1368_v50  ;;  %1369 = vmatpush.msrb.mxu2 %v1368_v50 }
 0x24d   : > { %1375 = vmatmul.f32.vlgmr.msrb.gmra.mxu2 %v2976_v58 }
 0x24e   : > { %v1396_v60 = vand.u32 4294901760, %v1395_v57  ;;  %1422 = vmatpush.msra.mxu2 %v1395_v57 }
 0x250   : > { %v1397_v3 = vsub.f32 %v1395_v57, %v1396_v60  ;;  %1471 = vmatpush.msrb.mxu2 %v1396_v60 }
 0x252   : > { %v1398_v31 = vand.u32 4294901760, %v1397_v3 }
 0x254   : > { %1399 = vmatpush.msrb.mxu3 %v1398_v31 }
 0x255   : > { %1401 = vmatmul.f32.vlgmr.msrb.gmra.mxu3 %v2966_v49  ;;  %1425 = vmatmul.f32.vlgmr.msra.gmra.mxu2 %v3349_v43 }
 0x256   : > { %1445 = vmatpush.msra.mxu3 %v1368_v50  ;;  %1520 = vmatpush.msra.mxu2 %v2985_v13 }
 0x258   : > { %1493 = vmatpush.msrb.mxu3 %v1368_v50 }
 0x25d   : > { %1449 = vmatmul.f32.vlgmr.msra.gmra.mxu3 %v3350_v33  ;;  %1473 = vmatmul.f32.vlgmr.msrb.gmra.mxu2 %v2966_v49 }
 0x25e   : > { %1550 = vmatpush.msra.mxu3 %v3351_v32  ;;  %1622 = vmatpush.msrb.mxu2 %v3352_v61 }
 0x265   : > { %1495 = vmatmul.f32.vlgmr.msrb.gmra.mxu3 %v2966_v49 }
 0x266   : > { %1644 = vmatpush.msrb.mxu3 %v2985_v13 }
 0x2d0   : > { %v1376_v1 = vpop.f32.mrf.mxu2 }
 0x2d8   : > { %v1402_v54 = vpop.f32.mrf.mxu3  ;;  %v1426_v8 = vpop.f32.mrf.mxu2 }
 0x2d9   : > { %v1403_v2 = vadd.f32 %v1402_v54, %v1376_v1  ;;  %v2445_v1 = vld [vmem:[%s2650_s1 + $0x10] sm:$0xff] }
 0x2db   : > { %v1427_v56 = vadd.f32 %v1426_v8, %v1403_v2 }
 0x2e0   : > { %v1450_v7 = vpop.f32.mrf.mxu3  ;;  %v1474_v9 = vpop.f32.mrf.mxu2 }
 0x2e1   : > { %v1451_v37 = vadd.f32 %v1450_v7, %v1427_v56 }
 0x2e3   : > { %v1475_v45 = vadd.f32 %v1474_v9, %v1451_v37 }
 0x2e8   : > { %v1496_v38 = vpop.f32.mrf.mxu3 }
 0x2e9   : > { %v1497_v39 = vadd.f32 %v1496_v38, %v1475_v45 }
 0x2eb   : > { %v1502_v44 = vsel %vm708_vm0, %v1497_v39, 0 }
 0x2ec   : > { %v1521_v50 = vand.u32 4294901760, %v1502_v44 }
 0x2ee   : > { %v1522_v57 = vsub.f32 %v1502_v44, %v1521_v50  ;;  %1552 = vmatmul.f32.vlgmr.msra.gmra.mxu3 %v1521_v50 }
 0x2ef   : > { %1851 = vmatpush.msra.mxu3 %v2656_v4 }
 0x2f0   : > { %1576 = vmatmul.f32.vlgmr.msrb.gmra.mxu0 %v1522_v57  ;;  %v1523_v60 = vand.u32 4294901760, %v1522_v57 }
 0x2f1   : > { %1853 = vmatpush.msra.mxu3 %v2658_v5  ;;  %1892 = vmatpush.msrb.mxu0 %v2698_v23  ;;  %v3165_v23 = vand.u32 4294901760, %v2445_v1 }
 0x2f2   : > { %1600 = vmatmul.f32.vlgmr.msrb.gmra.mxu1 %v1523_v60  ;;  %v1524_v3 = vsub.f32 %v1522_v57, %v1523_v60 }
 0x2f3   : > { %1855 = vmatpush.msra.mxu3 %v2660_v6  ;;  %1896 = vmatpush.msrb.mxu0 %v2701_v24 }
 0x2f4   : > { %v1525_v31 = vand.u32 4294901760, %v1524_v3  ;;  %1959 = vmatpush.msrb.mxu1 %v2656_v4  ;;  %v1687_v4 = vsub.f32 %v2445_v1, %v3165_v23 }
 0x2f5   : > { %1857 = vmatpush.msra.mxu3 %v2665_v10  ;;  %1900 = vmatpush.msrb.mxu0 %v2704_v25 }
 0x2f6   : > { %1526 = vmatmul.f32.vlgmr.msra.gmra.mxu2 %v1525_v31  ;;  %1646 = vmatmul.f32.vlgmr.msrb.gmra.mxu3 %v1521_v50 }
 0x2f7   : > { %1798 = vmatpush.msra.mxu2 %v2675_v15  ;;  %1859 = vmatpush.msra.mxu3 %v2667_v11  ;;  %v3355_v15 = vld [vmem:[#allocation8_spill] sm:$0xff] }
 0x2f8   : > { %1961 = vmatpush.msrb.mxu1 %v2658_v5  ;;  %1904 = vmatpush.msrb.mxu0 %v2711_v28  ;;  %v1688_v5 = vand.u32 4294901760, %v1687_v4 }
 0x2f9   : > { %1801 = vmatpush.msra.mxu2 %v2678_v16  ;;  %1861 = vmatpush.msra.mxu3 %v2669_v12  ;;  %v3356_v16 = vld [vmem:[#allocation15_spill] sm:$0xff] }
 0x2fa   : > { %1963 = vmatpush.msrb.mxu1 %v2660_v6  ;;  %1908 = vmatpush.msrb.mxu0 %v2727_v34  ;;  %v1689_v6 = vsub.f32 %v1687_v4, %v1688_v5 }
 0x2fb   : > { %1804 = vmatpush.msra.mxu2 %v2681_v17  ;;  %1863 = vmatpush.msra.mxu3 %v2683_v18  ;;  %v3357_v17 = vld [vmem:[#allocation10_spill] sm:$0xff] }
 0x2fc   : > { %1965 = vmatpush.msrb.mxu1 %v2665_v10  ;;  %1912 = vmatpush.msrb.mxu0 %v2731_v35  ;;  %v3353_v10 = vld [vmem:[#allocation7_spill] sm:$0xff] }
 0x2fd   : > { %1807 = vmatpush.msra.mxu2 %v2688_v20  ;;  %1865 = vmatpush.msra.mxu3 %v2706_v26  ;;  %v3359_v20 = vld [vmem:[#allocation22_spill] sm:$0xff] }
 0x2fe   : > { %1624 = vmatmul.f32.vlgmr.msrb.gmra.mxu2 %v1521_v50  ;;  %1967 = vmatpush.msrb.mxu1 %v2667_v11  ;;  %v3354_v11 = vld [vmem:[#allocation14_spill] sm:$0xff] }
 0x2ff   : > { %1810 = vmatpush.msra.mxu2 %v2691_v21  ;;  %1867 = vmatpush.msra.mxu3 %v2713_v29  ;;  %v3360_v21 = vld [vmem:[#allocation20_spill] sm:$0xff] }
 0x300   : > { %1916 = vmatpush.msrb.mxu0 %v2749_v42  ;;  %1969 = vmatpush.msrb.mxu1 %v2669_v12  ;;  %v1690_v12 = vand.u32 4294901760, %v1689_v6 }
 0x301   : > { %1813 = vmatpush.msra.mxu2 %v2694_v22  ;;  %1869 = vmatpush.msra.mxu3 %v2733_v36  ;;  %v3361_v22 = vld [vmem:[#allocation25_spill] sm:$0xff] }
 0x302   : > { %1920 = vmatpush.msrb.mxu0 %v2774_v51  ;;  %1971 = vmatpush.msrb.mxu1 %v2683_v18  ;;  %v3358_v18 = vld [vmem:[#allocation12_spill] sm:$0xff] }
 0x303   : > { %1816 = vmatpush.msra.mxu2 %v2716_v30  ;;  %1871 = vmatpush.msra.mxu3 %v2759_v46 }
 0x304   : > { %1924 = vmatpush.msrb.mxu0 %v3332_v59  ;;  %1973 = vmatpush.msrb.mxu1 %v2706_v26 }
 0x305   : > { %1819 = vmatpush.msra.mxu2 %v3333_v48  ;;  %1873 = vmatpush.msra.mxu3 %v2776_v52 }
 0x306   : > { %1928 = vmatpush.msrb.mxu0 %v3334_v63  ;;  %1975 = vmatpush.msrb.mxu1 %v2713_v29 }
 0x307   : > { %1822 = vmatpush.msra.mxu2 %v3353_v10  ;;  %1875 = vmatpush.msra.mxu3 %v2783_v55 }
 0x308   : > { %1932 = vmatpush.msrb.mxu0 %v3354_v11  ;;  %1977 = vmatpush.msrb.mxu1 %v2733_v36 }
 0x309   : > { %1825 = vmatpush.msra.mxu2 %v3355_v15  ;;  %1877 = vmatpush.msra.mxu3 %v2810_v0 }
 0x30a   : > { %1936 = vmatpush.msrb.mxu0 %v3356_v16  ;;  %1979 = vmatpush.msrb.mxu1 %v2759_v46  ;;  %v1500_v46 = vld [vmem:[#allocation2] sm:$0xff] }
 0x30b   : > { %1828 = vmatpush.msra.mxu2 %v3357_v17  ;;  %1879 = vmatpush.msra.mxu3 %v2831_v14 }
 0x30c   : > { %1691 = vmatmul.f32.vlgmr.msra.gmra.mxu0 %v1690_v12  ;;  %1792 = vmatmul.f32.vlgmr.msra.gmra.mxu1 %v3165_v23  ;;  %v2142_v12 = vld [vmem:[#allocation2 + $0x8] sm:$0xff] }
 0x30d   : > { %1831 = vmatpush.msra.mxu2 %v3358_v18  ;;  %1881 = vmatpush.msra.mxu3 %v2835_v27 }
 0x30e   : > { %1885 = vmatmul.f32.vlgmr.msra.gmra.mxu3 %v1688_v5  ;;  %1940 = vmatpush.msrb.mxu0 %v3341_v47 }
 0x30f   : > { %1834 = vmatpush.msra.mxu2 %v3342_v53  ;;  %1981 = vmatpush.msrb.mxu1 %v2776_v52 }
 0x310   : > { %1944 = vmatpush.msrb.mxu0 %v3343_v40 }
 0x311   : > { %1837 = vmatpush.msra.mxu2 %v3344_v19  ;;  %1983 = vmatpush.msrb.mxu1 %v2783_v55 }
 0x312   : > { %1948 = vmatpush.msrb.mxu0 %v3345_v41 }
 0x313   : > { %1840 = vmatpush.msra.mxu2 %v3346_v62  ;;  %1985 = vmatpush.msrb.mxu1 %v2810_v0 }
 0x314   : > { %1952 = vmatpush.msrb.mxu0 %v3359_v20 }
 0x315   : > { %1843 = vmatpush.msra.mxu2 %v3360_v21  ;;  %1987 = vmatpush.msrb.mxu1 %v2831_v14 }
 0x316   : > { %1846 = vmatmul.f32.vlgmr.msra.gmra.mxu2 %v1687_v4  ;;  %1954 = vmatmul.f32.vlgmr.msrb.gmra.mxu0 %v3165_v23 }
 0x317   : > { %1989 = vmatpush.msrb.mxu1 %v2835_v27  ;;  %2215 = vmatpush.msra.mxu0 %v3361_v22 }
 0x318   : > { %1991 = vmatmul.f32.vlgmr.msrb.gmra.mxu1 %v3165_v23 }
 0x319   : > { %2238 = vmatpush.msra.mxu1 %v2985_v13 }
 0x36d   : > { %v1577_v28 = vpop.f32.mrf.mxu0 }
 0x36f   : > { %v1601_v30 = vpop.f32.mrf.mxu1 }
 0x371   : > { %v1553_v24 = vpop.f32.mrf.mxu3 }
 0x379   : > { %v1527_v25 = vpop.f32.mrf.mxu2  ;;  %v1647_v42 = vpop.f32.mrf.mxu3 }
 0x37a   : > { %v1554_v26 = vadd.f32 %v1553_v24, %v1527_v25 }
 0x37c   : > { %v1578_v29 = vadd.f32 %v1577_v28, %v1554_v26 }
 0x37e   : > { %v1602_v34 = vadd.f32 %v1601_v30, %v1578_v29 }
 0x381   : > { %v1625_v35 = vpop.f32.mrf.mxu2 }
 0x382   : > { %v1626_v36 = vadd.f32 %v1625_v35, %v1602_v34 }
 0x384   : > { %v1648_v51 = vadd.f32 %v1647_v42, %v1626_v36 }
 0x386   : > { %v1650_v52 = vadd.f32 %v1648_v51, %v1500_v46 }
 0x388   : > { %1651 = vst [vmem:[#allocation2] sm:$0xff] %v1650_v52 }
 0x389   : > { %v1692_v55 = vpop.f32.mrf.mxu0  ;;  %v1793_v0 = vpop.f32.mrf.mxu1 }
 0x38a   : > { %v1794_v14 = vadd.f32 %v1793_v0, %v1692_v55 }
 0x391   : > { %v1886_v59 = vpop.f32.mrf.mxu3 }
 0x393   : > { %v1955_v63 = vpop.f32.mrf.mxu0 }
 0x395   : > { %v1992_v53 = vpop.f32.mrf.mxu1 }
 0x399   : > { %v1847_v27 = vpop.f32.mrf.mxu2 }
 0x39a   : > { %v1848_v48 = vadd.f32 %v1847_v27, %v1794_v14 }
 0x39c   : > { %v1887_v19 = vadd.f32 %v1886_v59, %v1848_v48 }
 0x39e   : > { %v1956_v40 = vadd.f32 %v1955_v63, %v1887_v19 }
 0x3a0   : > { %v1993_v62 = vadd.f32 %v1992_v53, %v1956_v40 }
 0x3a2   : > { %v2010_v47 = vand.u32 4294901760, %v1993_v62 }
 0x3a4   : > { %v2037_v41 = vsub.f32 %v1993_v62, %v2010_v47  ;;  %2011 = vmatpush.msrb.mxu2 %v2010_v47 }
 0x3a5   : > { %2017 = vmatmul.f32.vlgmr.msrb.gmra.mxu2 %v2976_v58 }
 0x3a6   : > { %v2038_v54 = vand.u32 4294901760, %v2037_v41  ;;  %2064 = vmatpush.msra.mxu2 %v2037_v41 }
 0x3a8   : > { %v2039_v8 = vsub.f32 %v2037_v41, %v2038_v54  ;;  %2113 = vmatpush.msrb.mxu2 %v2038_v54 }
 0x3aa   : > { %v2040_v2 = vand.u32 4294901760, %v2039_v8 }
 0x3ac   : > { %2041 = vmatpush.msrb.mxu3 %v2040_v2 }
 0x3ad   : > { %2043 = vmatmul.f32.vlgmr.msrb.gmra.mxu3 %v2966_v49  ;;  %2067 = vmatmul.f32.vlgmr.msra.gmra.mxu2 %v3349_v43 }
 0x3ae   : > { %2087 = vmatpush.msra.mxu3 %v2010_v47  ;;  %2162 = vmatpush.msra.mxu2 %v2985_v13 }
 0x3b0   : > { %2135 = vmatpush.msrb.mxu3 %v2010_v47 }
 0x3b5   : > { %2091 = vmatmul.f32.vlgmr.msra.gmra.mxu3 %v3350_v33  ;;  %2115 = vmatmul.f32.vlgmr.msrb.gmra.mxu2 %v2966_v49 }
 0x3b6   : > { %2192 = vmatpush.msra.mxu3 %v3351_v32  ;;  %2264 = vmatpush.msrb.mxu2 %v3352_v61 }
 0x3bd   : > { %2137 = vmatmul.f32.vlgmr.msrb.gmra.mxu3 %v2966_v49 }
 0x3be   : > { %2286 = vmatpush.msrb.mxu3 %v2985_v13 }
 0x428   : > { %v2018_v58 = vpop.f32.mrf.mxu2 }
 0x430   : > { %v2044_v7 = vpop.f32.mrf.mxu3  ;;  %v2068_v56 = vpop.f32.mrf.mxu2 }
 0x431   : > { %v2045_v43 = vadd.f32 %v2044_v7, %v2018_v58 }
 0x433   : > { %v2069_v9 = vadd.f32 %v2068_v56, %v2045_v43 }
 0x438   : > { %v2092_v37 = vpop.f32.mrf.mxu3  ;;  %v2116_v38 = vpop.f32.mrf.mxu2 }
 0x439   : > { %v2093_v45 = vadd.f32 %v2092_v37, %v2069_v9 }
 0x43b   : > { %v2117_v39 = vadd.f32 %v2116_v38, %v2093_v45 }
 0x440   : > { %v2138_v33 = vpop.f32.mrf.mxu3 }
 0x441   : > { %v2139_v44 = vadd.f32 %v2138_v33, %v2117_v39 }
 0x443   : > { %v2144_v50 = vsel %vm708_vm0, %v2139_v44, 0 }
 0x444   : > { %v2163_v32 = vand.u32 4294901760, %v2144_v50 }
 0x446   : > { %v2164_v57 = vsub.f32 %v2144_v50, %v2163_v32  ;;  %2194 = vmatmul.f32.vlgmr.msra.gmra.mxu3 %v2163_v32 }
 0x448   : > { %2218 = vmatmul.f32.vlgmr.msra.gmra.mxu0 %v2164_v57  ;;  %v2165_v49 = vand.u32 4294901760, %v2164_v57 }
 0x44a   : > { %2242 = vmatmul.f32.vlgmr.msra.gmra.mxu1 %v2165_v49  ;;  %v2166_v13 = vsub.f32 %v2164_v57, %v2165_v49 }
 0x44c   : > { %v2167_v61 = vand.u32 4294901760, %v2166_v13 }
 0x44e   : > { %2168 = vmatmul.f32.vlgmr.msra.gmra.mxu2 %v2167_v61  ;;  %2288 = vmatmul.f32.vlgmr.msrb.gmra.mxu3 %v2163_v32 }
 0x456   : > { %2266 = vmatmul.f32.vlgmr.msrb.gmra.mxu2 %v2163_v32 }
 0x4c5   : > { %v2219_v1 = vpop.f32.mrf.mxu0 }
 0x4c7   : > { %v2243_v4 = vpop.f32.mrf.mxu1 }
 0x4c9   : > { %v2195_v60 = vpop.f32.mrf.mxu3 }
 0x4d1   : > { %v2169_v3 = vpop.f32.mrf.mxu2  ;;  %v2289_v11 = vpop.f32.mrf.mxu3 }
 0x4d2   : > { %v2196_v31 = vadd.f32 %v2195_v60, %v2169_v3 }
 0x4d4   : > { %v2220_v23 = vadd.f32 %v2219_v1, %v2196_v31 }
 0x4d6   : > { %v2244_v5 = vadd.f32 %v2243_v4, %v2220_v23 }
 0x4d9   : > { %v2267_v6 = vpop.f32.mrf.mxu2 }
 0x4da   : > { %v2268_v10 = vadd.f32 %v2267_v6, %v2244_v5 }
 0x4dc   : > { %v2290_v15 = vadd.f32 %v2289_v11, %v2268_v10  ;;  %2297 = sbr.rel (%p2446_p9) target bundleno = 1259 (0x4eb), region = 48 }
 0x4de   : > { %v2292_v16 = vadd.f32 %v2290_v15, %v2142_v12 }
 0x4e0   : > { %2293 = vst [vmem:[#allocation2 + $0x8] sm:$0xff] %v2292_v16 }
 0x4e1   : > { %v2298_v17 = vld [vmem:[#allocation2 + $0x10] sm:$0xff]  ;;  %v2301_v18 = vld [vmem:[%s2625_s16] sm:$0xff]  ;;  %v2302_v22 = vld [vmem:[%s2625_s16 + $0x8] sm:$0xff] }
 0x4e2   : > { %v2299_v20 = vld [vmem:[#allocation2] sm:$0xff]  ;;  %v2304_v21 = vadd.f32 %v2301_v18, %v2298_v17  ;;  %v2303_v25 = vld [vmem:[%s2625_s16 + $0x10] sm:$0xff] }
 0x4e3   : > { %v2305_v26 = vadd.f32 %v2302_v22, %v2299_v20 }
 0x4e4   : > { %2307 = vst [vmem:[%s2645_s15] sm:$0xff] %v2304_v21 }
 0x4e5   : > { %2308 = vst [vmem:[%s2645_s15 + $0x8] sm:$0xff] %v2305_v26 }
 0x4e7   : > { %v2300_v24 = vld [vmem:[#allocation2 + $0x8] sm:$0xff] }
 0x4e8   : > { %v2306_v28 = vadd.f32 %v2303_v25, %v2300_v24 }
 0x4ea   : > { %2309 = vst [vmem:[%s2645_s15 + $0x10] sm:$0xff] %v2306_v28 }
 0x4eb PF: > { %s24_s29 = sadd.s32 1, %s2546_s29   ;;  %s3362_s25 = smov %s2538_s27 }
 0x4ec   : > { %p21_p10 = scmp.ge.s32.totalorder %s24_s29, 18   ;;  %s3363_s26 = smov %s2542_s28 }
 0x4ed   : > { %s3364_s27 = smov %s3367_s0  ;;  %s3365_s28 = smov %s3371_s30 }
 0x4ee   :  { %23 = sbr.rel (!%p21_p10) target bundleno = 9 (0x9), region = 94 }

</bundles_post_ra>
